<compile_context>
chip_gen: v7x
topology: tpu7x:2x2x1
jax: 0.10.0
libtpu: 0.0.40
codegen_flags: <defaults>
</compile_context>

<pallas_src>
import jax
import jax.numpy as jnp
from jax.experimental import pallas as pl
from jax.experimental.pallas import tpu as pltpu

H1, H2, H3 = 600, 300, 100
LANE = 128


def _round_up(n, m):
    return ((n + m - 1) // m) * m


def _mlp_kernel(x_ref,
                w1_ref, b1_ref,
                w2_ref, b2_ref,
                w3_ref, b3_ref,
                w4_ref, b4_ref,
                o_ref):
    # x / weights are bf16 (MXU bf16 path), accumulation in f32.
    # Bias add + ReLU run in f32, then re-cast to bf16 for the next matmul.
    x = x_ref[...]

    h = jnp.dot(x, w1_ref[...], preferred_element_type=jnp.float32) + b1_ref[...]
    h = jnp.maximum(h, 0.0).astype(jnp.bfloat16)   # Dropout -> identity, ReLU

    h = jnp.dot(h, w2_ref[...], preferred_element_type=jnp.float32) + b2_ref[...]
    h = jnp.maximum(h, 0.0).astype(jnp.bfloat16)

    h = jnp.dot(h, w3_ref[...], preferred_element_type=jnp.float32) + b3_ref[...]
    h = jnp.maximum(h, 0.0).astype(jnp.bfloat16)

    y = jnp.dot(h, w4_ref[...], preferred_element_type=jnp.float32) + b4_ref[...]
    o_ref[...] = y.astype(o_ref.dtype)


def mlp_forward(x, params, *, tile_b=128):
    """x: (B, input_dim) float32. params: dict of w1..w4 (in,out) and b1..b4 (1,out)."""
    B, in_dim = x.shape
    out_dim = params["w4"].shape[1]

    # ---- lane-dense feature padding (zeros; ReLU preserves zeros, so results
    #      after slicing are identical to the unpadded computation) ----
    in_p = _round_up(in_dim, LANE)      # 32  -> 128
    h1_p = _round_up(H1, LANE)          # 600 -> 640
    h2_p = _round_up(H2, LANE)          # 300 -> 384
    h3_p = _round_up(H3, LANE)          # 100 -> 128
    out_p = _round_up(out_dim, LANE)    # 10  -> 128

    # ---- batch tiling: single grid step for small batches, else 128-row tiles
    #      (use tile_b=256 on v6e/v7x for very large batches) ----
    tb = _round_up(B, 8) if B <= tile_b else tile_b
    B_p = _round_up(B, tb)

    def pad2(a, rows, cols):
        return jnp.pad(a, ((0, rows - a.shape[0]), (0, cols - a.shape[1])))

    x_p = pad2(x, B_p, in_p).astype(jnp.bfloat16)
    w1 = pad2(params["w1"], in_p, h1_p).astype(jnp.bfloat16)
    w2 = pad2(params["w2"], h1_p, h2_p).astype(jnp.bfloat16)
    w3 = pad2(params["w3"], h2_p, h3_p).astype(jnp.bfloat16)
    w4 = pad2(params["w4"], h3_p, out_p).astype(jnp.bfloat16)
    b1 = pad2(params["b1"], 1, h1_p)   # biases stay f32
    b2 = pad2(params["b2"], 1, h2_p)
    b3 = pad2(params["b3"], 1, h3_p)
    b4 = pad2(params["b4"], 1, out_p)

    grid = (B_p // tb,)

    def whole(shape):
        # Constant block index -> block stays resident in VMEM across grid steps.
        return pl.BlockSpec(shape, lambda i: (0, 0))

    in_specs = [
        pl.BlockSpec((tb, in_p), lambda i: (i, 0)),
        whole(w1.shape), whole(b1.shape),
        whole(w2.shape), whole(b2.shape),
        whole(w3.shape), whole(b3.shape),
        whole(w4.shape), whole(b4.shape),
    ]
    out_spec = pl.BlockSpec((tb, out_p), lambda i: (i, 0))

    flops = 2 * B_p * (in_p * h1_p + h1_p * h2_p + h2_p * h3_p + h3_p * out_p)
    bytes_accessed = (
        x_p.size * 2
        + (w1.size + w2.size + w3.size + w4.size) * 2
        + (b1.size + b2.size + b3.size + b4.size) * 4
        + B_p * out_p * 4)

    out = pl.pallas_call(
        _mlp_kernel,
        out_shape=jax.ShapeDtypeStruct((B_p, out_p), jnp.float32),
        grid_spec=pltpu.PrefetchScalarGridSpec(
            num_scalar_prefetch=0,
            grid=grid,
            in_specs=in_specs,
            out_specs=out_spec,
        ),
        compiler_params=pltpu.CompilerParams(
            dimension_semantics=("parallel",),
            vmem_limit_bytes=64 * 1024 * 1024,
        ),
        cost_estimate=pl.CostEstimate(
            flops=flops, transcendentals=0, bytes_accessed=bytes_accessed),
    )(x_p, w1, b1, w2, b2, w3, b3, w4, b4)

    return out[:B, :out_dim]


def init_params(key, input_dim, output_dim):
    """Deterministic init mirroring nn.Linear shapes (weights stored transposed)."""
    dims = [(input_dim, H1), (H1, H2), (H2, H3), (H3, output_dim)]
    params = {}
    for idx, (fan_in, fan_out) in enumerate(dims, start=1):
        key, kw, kb = jax.random.split(key, 3)
        bound = 1.0 / jnp.sqrt(fan_in)
        params[f"w{idx}"] = jax.random.uniform(
            kw, (fan_in, fan_out), jnp.float32, -bound, bound)
        params[f"b{idx}"] = jax.random.uniform(
            kb, (1, fan_out), jnp.float32, -bound, bound)
    return params


def mlp_reference(x, params):
    """Reference mirroring the kernel's bf16-matmul / f32-accumulate numerics."""
    def layer(h, w, b, relu=True):
        y = jnp.dot(h.astype(jnp.bfloat16), w.astype(jnp.bfloat16),
                    preferred_element_type=jnp.float32) + b
        return jnp.maximum(y, 0.0) if relu else y
    h = layer(x, params["w1"], params["b1"])
    h = layer(h, params["w2"], params["b2"])
    h = layer(h, params["w3"], params["b3"])
    return layer(h, params["w4"], params["b4"], relu=False)


if __name__ == "__main__":
    input_dim, output_dim = 32, 10
    batch = 16

    key = jax.random.PRNGKey(0)
    key, kx = jax.random.split(key)
    x = jax.random.normal(kx, (batch, input_dim), jnp.float32)
    params = init_params(key, input_dim, output_dim)

    out = mlp_forward(x, params)
    out = jax.block_until_ready(out)

    ref = mlp_reference(x, params)
    assert out.shape == (batch, output_dim)
    assert jnp.allclose(out, ref, atol=1e-2, rtol=1e-2), "mismatch vs reference"

    print("KERNEL_OK")
</pallas_src>

<mosaic_0001>
module attributes {stable_mosaic.version = 11 : i64} {
  func.func @_mlp_kernel(%arg0: i32, %arg1: memref<16x128xbf16, #tpu.memory_space<vmem>>, %arg2: memref<128x640xbf16, #tpu.memory_space<vmem>>, %arg3: memref<1x640xf32, #tpu.memory_space<vmem>>, %arg4: memref<640x384xbf16, #tpu.memory_space<vmem>>, %arg5: memref<1x384xf32, #tpu.memory_space<vmem>>, %arg6: memref<384x128xbf16, #tpu.memory_space<vmem>>, %arg7: memref<1x128xf32, #tpu.memory_space<vmem>>, %arg8: memref<128x128xbf16, #tpu.memory_space<vmem>>, %arg9: memref<1x128xf32, #tpu.memory_space<vmem>>, %arg10: memref<16x128xf32, #tpu.memory_space<vmem>>) attributes {dimension_semantics = [#tpu.dimension_semantics<parallel>], iteration_bounds = array<i64: 1>, scalar_prefetch = 0 : i64, scratch_operands = 0 : i64, tpu.core_type = #tpu.core_type<tc>, window_params = [{transform_indices = @transform_0, window_bounds = array<i64: 16, 128>}, {pipeline_mode = #tpu.pipeline_mode<synchronous>, transform_indices = @transform_1, window_bounds = array<i64: 128, 640>}, {pipeline_mode = #tpu.pipeline_mode<synchronous>, transform_indices = @transform_2, window_bounds = array<i64: 1, 640>}, {pipeline_mode = #tpu.pipeline_mode<synchronous>, transform_indices = @transform_3, window_bounds = array<i64: 640, 384>}, {pipeline_mode = #tpu.pipeline_mode<synchronous>, transform_indices = @transform_4, window_bounds = array<i64: 1, 384>}, {pipeline_mode = #tpu.pipeline_mode<synchronous>, transform_indices = @transform_5, window_bounds = array<i64: 384, 128>}, {pipeline_mode = #tpu.pipeline_mode<synchronous>, transform_indices = @transform_6, window_bounds = array<i64: 1, 128>}, {pipeline_mode = #tpu.pipeline_mode<synchronous>, transform_indices = @transform_7, window_bounds = array<i64: 128, 128>}, {pipeline_mode = #tpu.pipeline_mode<synchronous>, transform_indices = @transform_8, window_bounds = array<i64: 1, 128>}, {transform_indices = @transform_9, window_bounds = array<i64: 16, 128>}]} {
    %c0 = arith.constant 0 : index
    %c0_0 = arith.constant 0 : index
    %0 = vector.load %arg1[%c0, %c0_0] : memref<16x128xbf16, #tpu.memory_space<vmem>>, vector<16x128xbf16>
    %c0_1 = arith.constant 0 : index
    %c0_2 = arith.constant 0 : index
    %1 = vector.load %arg2[%c0_1, %c0_2] : memref<128x640xbf16, #tpu.memory_space<vmem>>, vector<128x640xbf16>
    %cst = arith.constant dense<0.000000e+00> : vector<16x640xf32>
    %2 = tpu.matmul %0, %1, %cst {dimension_numbers = #tpu.dot_dimension_numbers<[1], [0], [0], [1], [0, 0, 1, 1], [], []>} : vector<16x128xbf16>, vector<128x640xbf16>, vector<16x640xf32> -> vector<16x640xf32>
    %c0_3 = arith.constant 0 : index
    %c0_4 = arith.constant 0 : index
    %3 = vector.load %arg3[%c0_3, %c0_4] : memref<1x640xf32, #tpu.memory_space<vmem>>, vector<1x640xf32>
    %4 = vector.broadcast %3 : vector<1x640xf32> to vector<16x640xf32>
    %5 = arith.addf %2, %4 : vector<16x640xf32>
    %cst_5 = arith.constant 0.000000e+00 : f32
    %6 = vector.broadcast %cst_5 : f32 to vector<16x640xf32>
    %7 = arith.maximumf %5, %6 : vector<16x640xf32>
    %8 = arith.truncf %7 : vector<16x640xf32> to vector<16x640xbf16>
    %c0_6 = arith.constant 0 : index
    %c0_7 = arith.constant 0 : index
    %9 = vector.load %arg4[%c0_6, %c0_7] : memref<640x384xbf16, #tpu.memory_space<vmem>>, vector<640x384xbf16>
    %cst_8 = arith.constant dense<0.000000e+00> : vector<16x384xf32>
    %10 = tpu.matmul %8, %9, %cst_8 {dimension_numbers = #tpu.dot_dimension_numbers<[1], [0], [0], [1], [0, 0, 1, 1], [], []>} : vector<16x640xbf16>, vector<640x384xbf16>, vector<16x384xf32> -> vector<16x384xf32>
    %c0_9 = arith.constant 0 : index
    %c0_10 = arith.constant 0 : index
    %11 = vector.load %arg5[%c0_9, %c0_10] : memref<1x384xf32, #tpu.memory_space<vmem>>, vector<1x384xf32>
    %12 = vector.broadcast %11 : vector<1x384xf32> to vector<16x384xf32>
    %13 = arith.addf %10, %12 : vector<16x384xf32>
    %cst_11 = arith.constant 0.000000e+00 : f32
    %14 = vector.broadcast %cst_11 : f32 to vector<16x384xf32>
    %15 = arith.maximumf %13, %14 : vector<16x384xf32>
    %16 = arith.truncf %15 : vector<16x384xf32> to vector<16x384xbf16>
    %c0_12 = arith.constant 0 : index
    %c0_13 = arith.constant 0 : index
    %17 = vector.load %arg6[%c0_12, %c0_13] : memref<384x128xbf16, #tpu.memory_space<vmem>>, vector<384x128xbf16>
    %cst_14 = arith.constant dense<0.000000e+00> : vector<16x128xf32>
    %18 = tpu.matmul %16, %17, %cst_14 {dimension_numbers = #tpu.dot_dimension_numbers<[1], [0], [0], [1], [0, 0, 1, 1], [], []>} : vector<16x384xbf16>, vector<384x128xbf16>, vector<16x128xf32> -> vector<16x128xf32>
    %c0_15 = arith.constant 0 : index
    %c0_16 = arith.constant 0 : index
    %19 = vector.load %arg7[%c0_15, %c0_16] : memref<1x128xf32, #tpu.memory_space<vmem>>, vector<1x128xf32>
    %20 = vector.broadcast %19 : vector<1x128xf32> to vector<16x128xf32>
    %21 = arith.addf %18, %20 : vector<16x128xf32>
    %cst_17 = arith.constant 0.000000e+00 : f32
    %22 = vector.broadcast %cst_17 : f32 to vector<16x128xf32>
    %23 = arith.maximumf %21, %22 : vector<16x128xf32>
    %24 = arith.truncf %23 : vector<16x128xf32> to vector<16x128xbf16>
    %c0_18 = arith.constant 0 : index
    %c0_19 = arith.constant 0 : index
    %25 = vector.load %arg8[%c0_18, %c0_19] : memref<128x128xbf16, #tpu.memory_space<vmem>>, vector<128x128xbf16>
    %cst_20 = arith.constant dense<0.000000e+00> : vector<16x128xf32>
    %26 = tpu.matmul %24, %25, %cst_20 {dimension_numbers = #tpu.dot_dimension_numbers<[1], [0], [0], [1], [0, 0, 1, 1], [], []>} : vector<16x128xbf16>, vector<128x128xbf16>, vector<16x128xf32> -> vector<16x128xf32>
    %c0_21 = arith.constant 0 : index
    %c0_22 = arith.constant 0 : index
    %27 = vector.load %arg9[%c0_21, %c0_22] : memref<1x128xf32, #tpu.memory_space<vmem>>, vector<1x128xf32>
    %28 = vector.broadcast %27 : vector<1x128xf32> to vector<16x128xf32>
    %29 = arith.addf %26, %28 : vector<16x128xf32>
    %c0_23 = arith.constant 0 : index
    %c0_24 = arith.constant 0 : index
    %30 = vector.load %arg10[%c0_23, %c0_24] : memref<16x128xf32, #tpu.memory_space<vmem>>, vector<16x128xf32>
    tpu.vector_store %arg10[%c0_23, %c0_24], %29 {strides = array<i32>} : memref<16x128xf32, #tpu.memory_space<vmem>>, vector<16x128xf32>,
    return
  }
  func.func @transform_0(%arg0: i32) -> (i32, i32) {
    %c0_i32 = arith.constant 0 : i32
    %c0_i32_0 = arith.constant 0 : i32
    return %arg0, %c0_i32 : i32, i32
  }
  func.func @transform_1(%arg0: i32) -> (i32, i32) {
    %c0_i32 = arith.constant 0 : i32
    %c0_i32_0 = arith.constant 0 : i32
    %c0_i32_1 = arith.constant 0 : i32
    return %c0_i32, %c0_i32_0 : i32, i32
  }
  func.func @transform_2(%arg0: i32) -> (i32, i32) {
    %c0_i32 = arith.constant 0 : i32
    %c0_i32_0 = arith.constant 0 : i32
    %c0_i32_1 = arith.constant 0 : i32
    return %c0_i32, %c0_i32_0 : i32, i32
  }
  func.func @transform_3(%arg0: i32) -> (i32, i32) {
    %c0_i32 = arith.constant 0 : i32
    %c0_i32_0 = arith.constant 0 : i32
    %c0_i32_1 = arith.constant 0 : i32
    return %c0_i32, %c0_i32_0 : i32, i32
  }
  func.func @transform_4(%arg0: i32) -> (i32, i32) {
    %c0_i32 = arith.constant 0 : i32
    %c0_i32_0 = arith.constant 0 : i32
    %c0_i32_1 = arith.constant 0 : i32
    return %c0_i32, %c0_i32_0 : i32, i32
  }
  func.func @transform_5(%arg0: i32) -> (i32, i32) {
    %c0_i32 = arith.constant 0 : i32
    %c0_i32_0 = arith.constant 0 : i32
    %c0_i32_1 = arith.constant 0 : i32
    return %c0_i32, %c0_i32_0 : i32, i32
  }
  func.func @transform_6(%arg0: i32) -> (i32, i32) {
    %c0_i32 = arith.constant 0 : i32
    %c0_i32_0 = arith.constant 0 : i32
    %c0_i32_1 = arith.constant 0 : i32
    return %c0_i32, %c0_i32_0 : i32, i32
  }
  func.func @transform_7(%arg0: i32) -> (i32, i32) {
    %c0_i32 = arith.constant 0 : i32
    %c0_i32_0 = arith.constant 0 : i32
    %c0_i32_1 = arith.constant 0 : i32
    return %c0_i32, %c0_i32_0 : i32, i32
  }
  func.func @transform_8(%arg0: i32) -> (i32, i32) {
    %c0_i32 = arith.constant 0 : i32
    %c0_i32_0 = arith.constant 0 : i32
    %c0_i32_1 = arith.constant 0 : i32
    return %c0_i32, %c0_i32_0 : i32, i32
  }
  func.func @transform_9(%arg0: i32) -> (i32, i32) {
    %c0_i32 = arith.constant 0 : i32
    %c0_i32_0 = arith.constant 0 : i32
    return %arg0, %c0_i32 : i32, i32
  }
}

</mosaic_0001>

<bundles_post_ra>
// kernel: tpu_custom_call.1
= control target key start
LH: loop header
LB: loop body
LE: loop exit
PB: predicated region body
PF: predicated region fallthrough
CT: control target
= control target key end

     0   :  { %14 = vsyncpa [#allocation3], 0  ;;  %s3258_s0 = inlined_call_operand.hbm [shape: bf16[16,128], index: 0, kind: input, shape index: {}]   ;;  %s3259_s1 = inlined_call_operand.hbm [shape: bf16[128,640], index: 1, kind: input, shape index: {}]   ;;  %s3260_s2 = inlined_call_operand.hbm [shape: f32[1,640], index: 2, kind: input, shape index: {}]   ;;  %s3261_s3 = inlined_call_operand.hbm [shape: bf16[640,384], index: 3, kind: input, shape index: {}]   ;;  %s3262_s4 = inlined_call_operand.hbm [shape: f32[1,384], index: 4, kind: input, shape index: {}]   ;;  %s3263_s5 = inlined_call_operand.hbm [shape: bf16[384,128], index: 5, kind: input, shape index: {}]   ;;  %s3264_s6 = inlined_call_operand.hbm [shape: f32[1,128], index: 6, kind: input, shape index: {}]   ;;  %s3265_s7 = inlined_call_operand.hbm [shape: bf16[128,128], index: 7, kind: input, shape index: {}]   ;;  %s3266_s8 = inlined_call_operand.hbm [shape: f32[1,128], index: 8, kind: input, shape index: {}]   ;;  %s3267_s9 = inlined_call_operand.hbm [shape: f32[16,128], index: 9, kind: output, shape index: {}]  }
   0x1   :  { %15 = vsyncpa [#allocation6], 0 }
   0x2   :  { %16 = vsyncpa [#allocation9], 0 }
   0x3   :  { %17 = vsyncpa [#allocation12], 0 }
   0x4   :  { %18 = vsyncpa [#allocation15], 0 }
   0x5   :  { %19 = vsyncpa [#allocation4], 0  ;;  %s2969_s30 = smov [#allocation5]   ;;  %s2737_s13 = scalar_lea.hbm %s3259_s1, 5120 }
   0x6   :  { %s37_s10 = sshll.u32 %s2969_s30, 4  ;;  %p2738_p0 = scmp.ne.s32.totalorder %s3259_s1, %s2737_s13  ;;  %s38_s10 = int_to_ptr.vmem [resolvable:$true] %s37_s10 }
   0x7   :  { %p2741_p1 = scmp.lt.u32.totalorder %s2737_s13, %s3259_s1 }
   0x9   :  { %p2743_p2 = pnand %p2741_p1, %p2738_p0 }
   0xb   :  { %2746 = shalt.err (!%p2743_p2)
}
   0xc   :  { %s2747_s18 = scalar_lea.vmem %s38_s10, 5120  ;;  %p2752_p4 = scmp.lt.s32.totalorder %s38_s10, %s38_s10 }
   0xd   :  { %p2748_p3 = scmp.ne.s32.totalorder %s38_s10, %s2747_s18  ;;  %p2753_p5 = scmp.lt.s32.totalorder %s2747_s18, %s2747_s18 }
   0xf   :  { %p2754_p6 = por %p2753_p5, %p2752_p4 }
  0x11   :  { %p2755_p7 = pnand %p2754_p6, %p2748_p3 }
  0x13   :  { %2758 = shalt.err (!%p2755_p7)
}
  0x14   :  { %s2970_s19 = smov 320   ;;  %s2971_s20 = smov 20  }
  0x15   :  { %43 = dma.hbm_to_vmem [thread:$0]  %s3259_s1, 5120, %s38_s10, [#allocation6], %s2970_s19, %s2970_s19, %s2971_s20  }
  0x16   :  { %s2972_s23 = smov [#allocation8]   ;;  %s2759_s27 = scalar_lea.hbm %s3261_s3, 15360 }
  0x17   :  { %s59_s24 = sshll.u32 %s2972_s23, 4  ;;  %p2760_p8 = scmp.ne.s32.totalorder %s3261_s3, %s2759_s27  ;;  %s60_s24 = int_to_ptr.vmem [resolvable:$true] %s59_s24 }
  0x18   :  { %p2763_p9 = scmp.lt.u32.totalorder %s2759_s27, %s3261_s3 }
  0x1a   :  { %p2765_p10 = pnand %p2763_p9, %p2760_p8 }
  0x1c   :  { %2768 = shalt.err (!%p2765_p10)
}
  0x1d   :  { %s2769_s12 = scalar_lea.vmem %s60_s24, 15360  ;;  %p2774_p12 = scmp.lt.s32.totalorder %s60_s24, %s60_s24 }
  0x1e   :  { %p2770_p11 = scmp.ne.s32.totalorder %s60_s24, %s2769_s12  ;;  %p2775_p13 = scmp.lt.s32.totalorder %s2769_s12, %s2769_s12 }
  0x20   :  { %p2776_p0 = por %p2775_p13, %p2774_p12 }
  0x22   :  { %p2777_p1 = pnand %p2776_p0, %p2770_p11 }
  0x24   :  { %2780 = shalt.err (!%p2777_p1)
}
  0x25   :  { %s2973_s1 = smov 192   ;;  %s2974_s10 = smov 12  }
  0x26   :  { %65 = dma.hbm_to_vmem [thread:$0]  %s3261_s3, 15360, %s60_s24, [#allocation9], %s2973_s1, %s2973_s1, %s2974_s10  }
  0x27   :  { %s2975_s15 = smov [#allocation11]   ;;  %s2976_s17 = smov [#allocation14]  }
  0x28   :  { %s81_s16 = sshll.u32 %s2975_s15, 4  ;;  %s103_s18 = sshll.u32 %s2976_s17, 4  ;;  %s82_s16 = int_to_ptr.vmem [resolvable:$true] %s81_s16  ;;  %s3064_s18 = int_to_ptr.vmem [resolvable:$true] %s103_s18 }
  0x29   :  { %s2781_s21 = scalar_lea.hbm %s3263_s5, 3072 }
  0x2a   :  { %p2782_p2 = scmp.ne.s32.totalorder %s3263_s5, %s2781_s21  ;;  %p2785_p3 = scmp.lt.u32.totalorder %s2781_s21, %s3263_s5 }
  0x2c   :  { %p2787_p4 = pnand %p2785_p3, %p2782_p2 }
  0x2e   :  { %2790 = shalt.err (!%p2787_p4)
}
  0x2f   :  { %s2791_s3 = scalar_lea.vmem %s82_s16, 3072  ;;  %p2796_p6 = scmp.lt.s32.totalorder %s82_s16, %s82_s16 }
  0x30   :  { %p2792_p5 = scmp.ne.s32.totalorder %s82_s16, %s2791_s3  ;;  %p2797_p7 = scmp.lt.s32.totalorder %s2791_s3, %s2791_s3 }
  0x32   :  { %p2798_p8 = por %p2797_p7, %p2796_p6 }
  0x34   :  { %p2799_p9 = pnand %p2798_p8, %p2792_p5 }
  0x36   :  { %2802 = shalt.err (!%p2799_p9)
}
  0x37   :  { %s2977_s24 = smov 64   ;;  %s2978_s27 = smov 4  }
  0x38   :  { %87 = dma.hbm_to_vmem [thread:$0]  %s3263_s5, 3072, %s82_s16, [#allocation12], %s2977_s24, %s2977_s24, %s2978_s27  }
  0x39   :  { %s2803_s12 = scalar_lea.hbm %s3265_s7, 1024 }
  0x3a   :  { %p2804_p10 = scmp.ne.s32.totalorder %s3265_s7, %s2803_s12  ;;  %p2807_p11 = scmp.lt.u32.totalorder %s2803_s12, %s3265_s7 }
  0x3c   :  { %p2809_p12 = pnand %p2807_p11, %p2804_p10 }
  0x3e   :  { %2812 = shalt.err (!%p2809_p12)
}
  0x3f   :  { %s2813_s15 = scalar_lea.vmem %s3064_s18, 1024  ;;  %p2818_p0 = scmp.lt.s32.totalorder %s3064_s18, %s3064_s18 }
  0x40   :  { %p2814_p13 = scmp.ne.s32.totalorder %s3064_s18, %s2813_s15  ;;  %p2819_p1 = scmp.lt.s32.totalorder %s2813_s15, %s2813_s15 }
  0x42   :  { %p2820_p2 = por %p2819_p1, %p2818_p0 }
  0x44   :  { %p2821_p3 = pnand %p2820_p2, %p2814_p13 }
  0x46   :  { %2824 = shalt.err (!%p2821_p3)
}
  0x47   :  { %109 = dma.hbm_to_vmem [thread:$0]  %s3265_s7, 1024, %s3064_s18, [#allocation15], %s2977_s24, %s2977_s24, %s2978_s27  }
  0x48   :  { %s2979_s17 = smov [#allocation2]   ;;  %s2980_s20 = smov [#allocation7]  }
  0x49   :  { %s25_s19 = sshll.u32 %s2979_s17, 4  ;;  %s50_s21 = sshll.u32 %s2980_s20, 4  ;;  %s26_s19 = int_to_ptr.vmem [resolvable:$true] %s25_s19  ;;  %s51_s21 = int_to_ptr.vmem [resolvable:$true] %s50_s21 }
  0x4a   :  { %s2825_s25 = scalar_lea.hbm %s3258_s0, 128 }
  0x4b   :  { %p2826_p4 = scmp.ne.s32.totalorder %s3258_s0, %s2825_s25  ;;  %p2829_p5 = scmp.lt.u32.totalorder %s2825_s25, %s3258_s0 }
  0x4d   :  { %p2831_p6 = pnand %p2829_p5, %p2826_p4 }
  0x4f   :  { %2834 = shalt.err (!%p2831_p6)
}
  0x50   :  { %s2835_s7 = scalar_lea.vmem %s26_s19, 128  ;;  %p2840_p8 = scmp.lt.s32.totalorder %s26_s19, %s26_s19 }
  0x51   :  { %p2836_p7 = scmp.ne.s32.totalorder %s26_s19, %s2835_s7  ;;  %p2841_p9 = scmp.lt.s32.totalorder %s2835_s7, %s2835_s7 }
  0x53   :  { %p2842_p10 = por %p2841_p9, %p2840_p8 }
  0x55   :  { %p2843_p11 = pnand %p2842_p10, %p2836_p7 }
  0x57   :  { %2846 = shalt.err (!%p2843_p11)
}
  0x58   :  { %31 = dma.hbm_to_vmem [thread:$0]  %s3258_s0, 128, %s26_s19, [#allocation3], %s2977_s24, %s2977_s24, %s2978_s27  }
  0x59   :  { %s2847_s1 = scalar_lea.hbm %s3260_s2, 80 }
  0x5a   :  { %p2848_p12 = scmp.ne.s32.totalorder %s3260_s2, %s2847_s1  ;;  %p2851_p13 = scmp.lt.u32.totalorder %s2847_s1, %s3260_s2 }
  0x5c   :  { %p2853_p0 = pnand %p2851_p13, %p2848_p12 }
  0x5e   :  { %2856 = shalt.err (!%p2853_p0)
}
  0x5f   :  { %s2857_s5 = scalar_lea.vmem %s51_s21, 80  ;;  %s2861_s16 = scalar_lea.vmem %s51_s21, 96 }
  0x60   :  { %p2858_p1 = scmp.ne.s32.totalorder %s51_s21, %s2857_s5  ;;  %p2862_p2 = scmp.lt.s32.totalorder %s51_s21, %s51_s21 }
  0x61   :  { %p2863_p3 = scmp.lt.s32.totalorder %s2861_s16, %s2857_s5 }
  0x63   :  { %p2864_p4 = por %p2863_p3, %p2862_p2 }
  0x65   :  { %p2865_p5 = pnand %p2864_p4, %p2858_p1 }
  0x67   :  { %2868 = shalt.err (!%p2865_p5)
}
  0x68   :  { %53 = dma.hbm_to_vmem [thread:$0]  %s3260_s2, 80, %s51_s21, [#allocation6]  }
  0x69   :  { %s2981_s27 = smov [#allocation10]   ;;  %s2982_s19 = smov [#allocation13]  }
  0x6a   :  { %s72_s17 = sshll.u32 %s2981_s27, 4  ;;  %s94_s20 = sshll.u32 %s2982_s19, 4  ;;  %s73_s17 = int_to_ptr.vmem [resolvable:$true] %s72_s17  ;;  %s95_s20 = int_to_ptr.vmem [resolvable:$true] %s94_s20 }
  0x6b   :  { %s2869_s25 = scalar_lea.hbm %s3262_s4, 48 }
  0x6c   :  { %p2870_p6 = scmp.ne.s32.totalorder %s3262_s4, %s2869_s25  ;;  %p2873_p7 = scmp.lt.u32.totalorder %s2869_s25, %s3262_s4 }
  0x6e   :  { %p2875_p8 = pnand %p2873_p7, %p2870_p6 }
  0x70   :  { %2878 = shalt.err (!%p2875_p8)
}
  0x71   :  { %s2879_s2 = scalar_lea.vmem %s73_s17, 48  ;;  %s2883_s21 = scalar_lea.vmem %s73_s17, 64 }
  0x72   :  { %p2880_p9 = scmp.ne.s32.totalorder %s73_s17, %s2879_s2  ;;  %p2884_p10 = scmp.lt.s32.totalorder %s73_s17, %s73_s17 }
  0x73   :  { %p2885_p11 = scmp.lt.s32.totalorder %s2883_s21, %s2879_s2 }
  0x75   :  { %p2886_p12 = por %p2885_p11, %p2884_p10 }
  0x77   :  { %p2887_p13 = pnand %p2886_p12, %p2880_p9 }
  0x79   :  { %2890 = shalt.err (!%p2887_p13)
}
  0x7a   :  { %75 = dma.hbm_to_vmem [thread:$0]  %s3262_s4, 48, %s73_s17, [#allocation9]  }
  0x7b   :  { %s2891_s12 = scalar_lea.hbm %s3264_s6, 16 }
  0x7c   :  { %p2892_p0 = scmp.ne.s32.totalorder %s3264_s6, %s2891_s12  ;;  %p2895_p1 = scmp.lt.u32.totalorder %s2891_s12, %s3264_s6 }
  0x7e   :  { %p2897_p2 = pnand %p2895_p1, %p2892_p0 }
  0x80   :  { %2900 = shalt.err (!%p2897_p2)
}
  0x81   :  { %s2901_s15 = scalar_lea.vmem %s95_s20, 16  ;;  %s2905_s5 = scalar_lea.vmem %s95_s20, 32 }
  0x82   :  { %p2902_p3 = scmp.ne.s32.totalorder %s95_s20, %s2901_s15  ;;  %p2906_p4 = scmp.lt.s32.totalorder %s95_s20, %s95_s20 }
  0x83   :  { %p2907_p5 = scmp.lt.s32.totalorder %s2905_s5, %s2901_s15 }
  0x85   :  { %p2908_p6 = por %p2907_p5, %p2906_p4 }
  0x87   :  { %p2909_p7 = pnand %p2908_p6, %p2902_p3 }
  0x89   :  { %2912 = shalt.err (!%p2909_p7)
}
  0x8a   :  { %97 = dma.hbm_to_vmem [thread:$0]  %s3264_s6, 16, %s95_s20, [#allocation12]  }
  0x8b   :  { %s2983_s0 = smov [#allocation16]   ;;  %s2913_s19 = scalar_lea.hbm %s3266_s8, 16 }
  0x8c   :  { %s116_s24 = sshll.u32 %s2983_s0, 4  ;;  %p2914_p8 = scmp.ne.s32.totalorder %s3266_s8, %s2913_s19  ;;  %s117_s24 = int_to_ptr.vmem [resolvable:$true] %s116_s24 }
  0x8d   :  { %p2917_p9 = scmp.lt.u32.totalorder %s2913_s19, %s3266_s8 }
  0x8f   :  { %p2919_p10 = pnand %p2917_p9, %p2914_p8 }
  0x91   :  { %2922 = shalt.err (!%p2919_p10)
}
  0x92   :  { %s2923_s3 = scalar_lea.vmem %s117_s24, 16  ;;  %s2927_s6 = scalar_lea.vmem %s117_s24, 32 }
  0x93   :  { %p2924_p11 = scmp.ne.s32.totalorder %s117_s24, %s2923_s3  ;;  %p2928_p12 = scmp.lt.s32.totalorder %s117_s24, %s117_s24 }
  0x94   :  { %p2929_p13 = scmp.lt.s32.totalorder %s2927_s6, %s2923_s3 }
  0x96   :  { %p2930_p0 = por %p2929_p13, %p2928_p12 }
  0x98   :  { %p2931_p1 = pnand %p2930_p0, %p2924_p11 }
  0x9a   :  { %2934 = shalt.err (!%p2931_p1)
}
  0x9b   :  { %119 = dma.hbm_to_vmem [thread:$0]  %s3266_s8, 16, %s117_s24, [#allocation15]  }
  0x9c   :  { %2957 = dma.done.wait [#allocation3], 128  }
  0x9d   :  { %2958 = vsyncadd [#allocation3], 4294967168 }
  0x9e   :  { %2959 = dma.done.wait [#allocation6], 5200  }
  0x9f   :  { %2960 = vsyncadd [#allocation6], 4294962096 }
  0xa0   :  { %2961 = dma.done.wait [#allocation9], 15408  }
  0xa1   :  { %2962 = vsyncadd [#allocation9], 4294951888 }
  0xa2   :  { %2963 = dma.done.wait [#allocation12], 3088  }
  0xa3   :  { %2964 = vsyncadd [#allocation12], 4294964208 }
  0xa4   :  { %2965 = dma.done.wait [#allocation15], 1040  }
  0xa5   :  { %2966 = vsyncadd [#allocation15], 4294966256  ;;  %v2984_v0 = vmov 0   ;;  %v2488_v1 = vld [vmem:[#allocation5 + $0x4] ss:$20 sps:$4 sm:$0xff]   ;;  %v2985_v32 = vmov 0.0  }
  0xa6   :  { %471 = vmatprep.mubr.bf16.mxu0 %v2984_v0  ;;  %514 = vmatprep.mubr.bf16.mxu1 %v2984_v0  ;;  %v2490_v2 = vld [vmem:[#allocation5] ss:$20 sps:$4 sm:$0xff]   ;;  %v2493_v4 = vld [vmem:[#allocation5 + $0x28] ss:$20 sps:$4 sm:$0xff]   ;;  %v2496_v6 = vld [vmem:[#allocation5 + $0x50] ss:$20 sps:$4 sm:$0xff]  }
  0xa7   :  { %439 = vmatprep.subr.bf16.mxu0 %v2488_v1  ;;  %v2491_v3 = vld [vmem:[#allocation5 + $0x2c] ss:$20 sps:$4 sm:$0xff]   ;;  %v2494_v5 = vld [vmem:[#allocation5 + $0x54] ss:$20 sps:$4 sm:$0xff]   ;;  %v2497_v7 = vld [vmem:[#allocation5 + $0x7c] ss:$20 sps:$4 sm:$0xff]  }
  0xa8   :  { %440 = vmatpush1.bf16.msra.mxu0 %v2490_v2  ;;  %v2499_v8 = vld [vmem:[#allocation5 + $0x78] ss:$20 sps:$4 sm:$0xff]   ;;  %v2515_v11 = vld [vmem:[#allocation5 + $0x8] ss:$20 sps:$4 sm:$0xff]   ;;  %v2518_v13 = vld [vmem:[#allocation5 + $0x30] ss:$20 sps:$4 sm:$0xff]  }
  0xa9   :  { %441 = vmatprep.subr.bf16.mxu0 %v2491_v3  ;;  %v2512_v9 = vld [vmem:[#allocation5 + $0xc] ss:$20 sps:$4 sm:$0xff]   ;;  %v2500_v10 = vld [vmem:[#allocation5 + $0xa4] ss:$20 sps:$4 sm:$0xff]   ;;  %v2516_v12 = vld [vmem:[#allocation5 + $0x34] ss:$20 sps:$4 sm:$0xff]  }
  0xaa   :  { %482 = vmatprep.subr.bf16.mxu1 %v2512_v9  ;;  %v2502_v14 = vld [vmem:[#allocation5 + $0xa0] ss:$20 sps:$4 sm:$0xff]   ;;  %v2519_v15 = vld [vmem:[#allocation5 + $0x5c] ss:$20 sps:$4 sm:$0xff]   ;;  %v2521_v17 = vld [vmem:[#allocation5 + $0x58] ss:$20 sps:$4 sm:$0xff]  }
  0xab   :  { %483 = vmatpush1.bf16.msra.mxu1 %v2515_v11  ;;  %v2503_v16 = vld [vmem:[#allocation5 + $0xcc] ss:$20 sps:$4 sm:$0xff]   ;;  %v2505_v18 = vld [vmem:[#allocation5 + $0xc8] ss:$20 sps:$4 sm:$0xff]   ;;  %v2522_v19 = vld [vmem:[#allocation5 + $0x84] ss:$20 sps:$4 sm:$0xff]  }
  0xac   :  { %442 = vmatpush1.bf16.msra.mxu0 %v2493_v4  ;;  %484 = vmatprep.subr.bf16.mxu1 %v2516_v12  ;;  %v2506_v20 = vld [vmem:[#allocation5 + $0xf4] ss:$20 sps:$4 sm:$0xff]   ;;  %v2508_v21 = vld [vmem:[#allocation5 + $0xf0] ss:$20 sps:$4 sm:$0xff]   ;;  %v2525_v23 = vld [vmem:[#allocation5 + $0xac] ss:$20 sps:$4 sm:$0xff]  }
  0xad   :  { %443 = vmatprep.subr.bf16.mxu0 %v2494_v5  ;;  %v2524_v22 = vld [vmem:[#allocation5 + $0x80] ss:$20 sps:$4 sm:$0xff]   ;;  %v2509_v24 = vld [vmem:[#allocation5 + $0x11c] ss:$20 sps:$4 sm:$0xff]   ;;  %v2511_v25 = vld [vmem:[#allocation5 + $0x118] ss:$20 sps:$4 sm:$0xff]  }
  0xae   :  { %v2527_v26 = vld [vmem:[#allocation5 + $0xa8] ss:$20 sps:$4 sm:$0xff]   ;;  %v2530_v29 = vld [vmem:[#allocation5 + $0xd0] ss:$20 sps:$4 sm:$0xff]   ;;  %v2533_v33 = vld [vmem:[#allocation5 + $0xf8] ss:$20 sps:$4 sm:$0xff]  }
  0xaf   :  { %485 = vmatpush1.bf16.msra.mxu1 %v2518_v13  ;;  %v2528_v27 = vld [vmem:[#allocation5 + $0xd4] ss:$20 sps:$4 sm:$0xff]   ;;  %v3166_v28 = vld [vmem:[#allocation2] sm:$0xff]   ;;  %v2537_v31 = vld [vmem:[#allocation5 + $0x10] ss:$20 sps:$4 sm:$0xff]   ;;  %vm2986_vm0 = vmmov 0  }
  0xb0   :  { %444 = vmatpush1.bf16.msra.mxu0 %v2496_v6  ;;  %486 = vmatprep.subr.bf16.mxu1 %v2519_v15  ;;  %v2531_v30 = vld [vmem:[#allocation5 + $0xfc] ss:$20 sps:$4 sm:$0xff]   ;;  %v2534_v34 = vld [vmem:[#allocation5 + $0x124] ss:$20 sps:$4 sm:$0xff]   ;;  %v2536_v36 = vld [vmem:[#allocation5 + $0x120] ss:$20 sps:$4 sm:$0xff]  }
  0xb1   :  { %445 = vmatprep.subr.bf16.mxu0 %v2497_v7  ;;  %v2538_v35 = vld [vmem:[#allocation5 + $0x38] ss:$20 sps:$4 sm:$0xff]   ;;  %v2539_v37 = vld [vmem:[#allocation5 + $0x60] ss:$20 sps:$4 sm:$0xff]   ;;  %v2540_v39 = vld [vmem:[#allocation5 + $0x88] ss:$20 sps:$4 sm:$0xff]  }
  0xb2   :  { %v2547_v38 = vld [vmem:[#allocation8 + $0x4] ss:$12 sps:$4 sm:$0xff]   ;;  %v2545_v40 = vld [vmem:[#allocation8] ss:$12 sps:$4 sm:$0xff]   ;;  %v2550_v41 = vld [vmem:[#allocation8 + $0x1c] ss:$12 sps:$4 sm:$0xff]  }
  0xb3   :  { %487 = vmatpush1.bf16.msra.mxu1 %v2521_v17  ;;  %v2541_v42 = vld [vmem:[#allocation5 + $0xb0] ss:$20 sps:$4 sm:$0xff]   ;;  %v2548_v43 = vld [vmem:[#allocation8 + $0x18] ss:$12 sps:$4 sm:$0xff]   ;;  %s2987_s8 = smov [#allocation17]  }
  0xb4   :  { %446 = vmatpush1.bf16.msra.mxu0 %v2499_v8  ;;  %488 = vmatprep.subr.bf16.mxu1 %v2522_v19  ;;  %v2553_v44 = vld [vmem:[#allocation8 + $0x34] ss:$12 sps:$4 sm:$0xff]   ;;  %v2551_v46 = vld [vmem:[#allocation8 + $0x30] ss:$12 sps:$4 sm:$0xff]   ;;  %v2556_v47 = vld [vmem:[#allocation8 + $0x4c] ss:$12 sps:$4 sm:$0xff]  }
  0xb5   :  { %447 = vmatprep.subr.bf16.mxu0 %v2500_v10  ;;  %v2542_v45 = vld [vmem:[#allocation5 + $0xd8] ss:$20 sps:$4 sm:$0xff]   ;;  %v2543_v49 = vld [vmem:[#allocation5 + $0x100] ss:$20 sps:$4 sm:$0xff]   ;;  %v2544_v51 = vld [vmem:[#allocation5 + $0x128] ss:$20 sps:$4 sm:$0xff]  }
  0xb6   :  { %v2554_v48 = vld [vmem:[#allocation8 + $0x48] ss:$12 sps:$4 sm:$0xff]   ;;  %v2559_v50 = vld [vmem:[#allocation8 + $0x64] ss:$12 sps:$4 sm:$0xff]   ;;  %v2557_v52 = vld [vmem:[#allocation8 + $0x60] ss:$12 sps:$4 sm:$0xff]  }
  0xb7   :  { %489 = vmatpush1.bf16.msra.mxu1 %v2524_v22  ;;  %v2562_v53 = vld [vmem:[#allocation8 + $0x7c] ss:$12 sps:$4 sm:$0xff]   ;;  %v2560_v54 = vld [vmem:[#allocation8 + $0x78] ss:$12 sps:$4 sm:$0xff]   ;;  %v2565_v56 = vld [vmem:[#allocation8 + $0x94] ss:$12 sps:$4 sm:$0xff]  }
  0xb8   :  { %448 = vmatpush1.bf16.msra.mxu0 %v2502_v14  ;;  %490 = vmatprep.subr.bf16.mxu1 %v2525_v23  ;;  %v2572_v55 = vld [vmem:[#allocation8 + $0xc8] ss:$12 sps:$4 sm:$0xff]   ;;  %v2577_v58 = vld [vmem:[#allocation8 + $0xe0] ss:$12 sps:$4 sm:$0xff]   ;;  %v2563_v59 = vld [vmem:[#allocation8 + $0x90] ss:$12 sps:$4 sm:$0xff]  }
  0xb9   :  { %449 = vmatprep.subr.bf16.mxu0 %v2503_v16  ;;  %v2573_v57 = vld [vmem:[#allocation8 + $0x8] ss:$12 sps:$4 sm:$0xff]   ;;  %v2568_v60 = vld [vmem:[#allocation8 + $0xac] ss:$12 sps:$4 sm:$0xff]   ;;  %v2571_v1 = vld [vmem:[#allocation8 + $0xc4] ss:$12 sps:$4 sm:$0xff]  }
  0xba   :  { %v2578_v61 = vld [vmem:[#allocation8 + $0x20] ss:$12 sps:$4 sm:$0xff]   ;;  %v2582_v62 = vld [vmem:[#allocation8 + $0xf8] ss:$12 sps:$4 sm:$0xff]   ;;  %v2566_v63 = vld [vmem:[#allocation8 + $0xa8] ss:$12 sps:$4 sm:$0xff]  }
  0xbb   :  { %491 = vmatpush1.bf16.msra.mxu1 %v2527_v26  ;;  %v2583_v2 = vld [vmem:[#allocation8 + $0x38] ss:$12 sps:$4 sm:$0xff]   ;;  %v2587_v3 = vld [vmem:[#allocation8 + $0x110] ss:$12 sps:$4 sm:$0xff]   ;;  %v2569_v4 = vld [vmem:[#allocation8 + $0xc0] ss:$12 sps:$4 sm:$0xff]  }
  0xbc   :  { %450 = vmatpush1.bf16.msra.mxu0 %v2505_v18  ;;  %492 = vmatprep.subr.bf16.mxu1 %v2528_v27  ;;  %v2576_v5 = vld [vmem:[#allocation8 + $0xdc] ss:$12 sps:$4 sm:$0xff]   ;;  %v2574_v8 = vld [vmem:[#allocation8 + $0xd8] ss:$12 sps:$4 sm:$0xff]   ;;  %v2581_v9 = vld [vmem:[#allocation8 + $0xf4] ss:$12 sps:$4 sm:$0xff]  }
  0xbd   :  { %451 = vmatprep.subr.bf16.mxu0 %v2506_v20  ;;  %v2588_v6 = vld [vmem:[#allocation8 + $0x50] ss:$12 sps:$4 sm:$0xff]   ;;  %v2592_v7 = vld [vmem:[#allocation8 + $0x128] ss:$12 sps:$4 sm:$0xff]   ;;  %v2597_v11 = vld [vmem:[#allocation8 + $0x140] ss:$12 sps:$4 sm:$0xff]  }
  0xbe   :  { %v2593_v10 = vld [vmem:[#allocation8 + $0x68] ss:$12 sps:$4 sm:$0xff]   ;;  %v2579_v12 = vld [vmem:[#allocation8 + $0xf0] ss:$12 sps:$4 sm:$0xff]   ;;  %v2586_v13 = vld [vmem:[#allocation8 + $0x10c] ss:$12 sps:$4 sm:$0xff]  }
  0xbf   :  { %493 = vmatpush1.bf16.msra.mxu1 %v2530_v29  ;;  %v2598_v14 = vld [vmem:[#allocation8 + $0x80] ss:$12 sps:$4 sm:$0xff]   ;;  %v2584_v15 = vld [vmem:[#allocation8 + $0x108] ss:$12 sps:$4 sm:$0xff]   ;;  %v2591_v16 = vld [vmem:[#allocation8 + $0x124] ss:$12 sps:$4 sm:$0xff]  }
  0xc0   :  { %452 = vmatpush1.bf16.msra.mxu0 %v2508_v21  ;;  %494 = vmatprep.subr.bf16.mxu1 %v2531_v30  ;;  %v2589_v17 = vld [vmem:[#allocation8 + $0x120] ss:$12 sps:$4 sm:$0xff]   ;;  %v2596_v18 = vld [vmem:[#allocation8 + $0x13c] ss:$12 sps:$4 sm:$0xff]   ;;  %v2594_v19 = vld [vmem:[#allocation8 + $0x138] ss:$12 sps:$4 sm:$0xff]   ;;  %v200_v30 = vlaneseq }
  0xc1   :  { %453 = vmatprep.subr.bf16.mxu0 %v2509_v24  ;;  %v2601_v20 = vld [vmem:[#allocation8 + $0x154] ss:$12 sps:$4 sm:$0xff]   ;;  %v2602_v21 = vld [vmem:[#allocation8 + $0x158] ss:$12 sps:$4 sm:$0xff]   ;;  %v2599_v22 = vld [vmem:[#allocation8 + $0x150] ss:$12 sps:$4 sm:$0xff]  }
  0xc2   :  { %v2603_v23 = vld [vmem:[#allocation8 + $0x98] ss:$12 sps:$4 sm:$0xff]   ;;  %v2604_v26 = vld [vmem:[#allocation8 + $0x168] ss:$12 sps:$4 sm:$0xff]   ;;  %v2608_v27 = vld [vmem:[#allocation8 + $0xb0] ss:$12 sps:$4 sm:$0xff]  }
  0xc3   :  { %495 = vmatpush1.bf16.msra.mxu1 %v2533_v33  ;;  %v2606_v24 = vld [vmem:[#allocation8 + $0x16c] ss:$12 sps:$4 sm:$0xff]   ;;  %v2612_v29 = vld [vmem:[#allocation8 + $0x248] ss:$12 sps:$4 sm:$0xff]   ;;  %s2062_s29 = sshll.u32 %s2987_s8, 4  ;;  %s2063_s29 = int_to_ptr.vmem [resolvable:$true] %s2062_s29 }
  0xc4   :  { %454 = vmatpush1.bf16.msra.mxu0 %v2511_v25  ;;  %496 = vmatprep.subr.bf16.mxu1 %v2534_v34  ;;  %v2607_v25 = vld [vmem:[#allocation8 + $0x170] ss:$12 sps:$4 sm:$0xff]   ;;  %s2935_s2 = scalar_lea.vmem %s2063_s29, 256  ;;  %p2940_p3 = scmp.lt.s32.totalorder %s2063_s29, %s2063_s29 }
  0xc5   :  { %2375 = vmatprep.subr.bf16.mxu0 %v2985_v32  ;;  %v3184_v34 = vld [vmem:[#allocation7] sm:$0x1f]  ;;  %p2936_p2 = scmp.ne.s32.totalorder %s2063_s29, %s2935_s2  ;;  %p2941_p4 = scmp.lt.s32.totalorder %s2935_s2, %s2935_s2 }
  0xc7   :  { %472 = vmatmul.mubr.bf16.vlgmr.msra.gmra.mrb[0].mxu0 %v3166_v28  ;;  %497 = vmatpush1.bf16.msra.mxu1 %v2536_v36  ;;  %p2942_p5 = por %p2941_p4, %p2940_p3 }
  0xc8   :  { %2376 = vmatpush3.bf16.msra.mxu0 %v2537_v31  ;;  %2391 = vmatprep.mubr.msk.bf16.mxu0 %vm2986_vm0, %v2985_v32  ;;  %v3181_v31 = vshrl.u32 %v200_v30, 7  ;;  %v2641_v30 = vld [vmem:[#allocation8 + $0x214] ss:$12 sps:$4 sm:$0xff]  }
  0xc9   :  { %2377 = vmatprep.subr.bf16.mxu0 %v2985_v32  ;;  %1398 = vmatprep.subr.bf16.mxu1 %v2547_v38  ;;  %p2943_p6 = pnand %p2942_p5, %p2936_p2 }
  0xca   :  { %515 = vmatmul.mubr.bf16.vlgmr.msra.gmra.mrb[0].mxu1 %v3166_v28  ;;  %v202_v33 = vsub.s32 0, %v3181_v31 }
  0xcb   :  { %1399 = vmatpush1.bf16.msra.mxu1 %v2545_v40 }
  0xcc   :  { %2378 = vmatpush3.bf16.msra.mxu0 %v2538_v35  ;;  %1400 = vmatprep.subr.bf16.mxu1 %v2550_v41  ;;  %v206_v35 = vsub.s32 1, %v3181_v31  ;;  %v203_v36 = vrot.slane %v3184_v34, %v202_v33 }
  0xcd   :  { %2379 = vmatprep.subr.bf16.mxu0 %v2985_v32 }
  0xcf   :  { %1401 = vmatpush1.bf16.msra.mxu1 %v2548_v43 }
  0xd0   :  { %2380 = vmatpush3.bf16.msra.mxu0 %v2539_v37  ;;  %1402 = vmatprep.subr.bf16.mxu1 %v2553_v44  ;;  %v207_v37 = vrot.slane %v3184_v34, %v206_v35 }
  0xd1   :  { %2381 = vmatprep.subr.bf16.mxu0 %v2985_v32 }
  0xd3   :  { %1403 = vmatpush1.bf16.msra.mxu1 %v2551_v46  ;;  %v210_v46 = vsub.s32 2, %v3181_v31 }
  0xd4   :  { %2382 = vmatpush3.bf16.msra.mxu0 %v2540_v39  ;;  %1404 = vmatprep.subr.bf16.mxu1 %v2556_v47 }
  0xd5   :  { %2383 = vmatprep.subr.bf16.mxu0 %v2985_v32 }
  0xd7   :  { %1405 = vmatpush1.bf16.msra.mxu1 %v2554_v48 }
  0xd8   :  { %2384 = vmatpush3.bf16.msra.mxu0 %v2541_v42  ;;  %1406 = vmatprep.subr.bf16.mxu1 %v2559_v50 }
  0xd9   :  { %2385 = vmatprep.subr.bf16.mxu0 %v2985_v32 }
  0xdb   :  { %1407 = vmatpush1.bf16.msra.mxu1 %v2557_v52 }
  0xdc   :  { %2386 = vmatpush3.bf16.msra.mxu0 %v2542_v45  ;;  %1408 = vmatprep.subr.bf16.mxu1 %v2562_v53 }
  0xdd   :  { %2387 = vmatprep.subr.bf16.mxu0 %v2985_v32 }
  0xdf   :  { %1409 = vmatpush1.bf16.msra.mxu1 %v2560_v54  ;;  %v2609_v54 = vld [vmem:[#allocation8 + $0x180] ss:$12 sps:$4 sm:$0xff]  }
  0xe0   :  { %2388 = vmatpush3.bf16.msra.mxu0 %v2543_v49  ;;  %1410 = vmatprep.subr.bf16.mxu1 %v2565_v56  ;;  %v214_v49 = vsub.s32 3, %v3181_v31  ;;  %v211_v56 = vrot.slane %v3184_v34, %v210_v46 }
  0xe1   :  { %2389 = vmatprep.subr.bf16.mxu0 %v2985_v32 }
  0xe3   :  { %1411 = vmatpush1.bf16.msra.mxu1 %v2563_v59  ;;  %v215_v59 = vrot.slane %v3184_v34, %v214_v49 }
  0xe4   :  { %2390 = vmatpush3.bf16.msra.mxu0 %v2544_v51  ;;  %1412 = vmatprep.subr.bf16.mxu1 %v2568_v60 }
  0xe5   :  { %2282 = vmatprep.subr.bf16.mxu0 %v2572_v55  ;;  %v2613_v55 = vld [vmem:[#allocation8 + $0x188] ss:$12 sps:$4 sm:$0xff]  }
  0xe7   :  { %2392 = vmatmul.mubr.bf16.vlgmr.msra.gmra.mrb[4].mxu0 %v3166_v28  ;;  %1413 = vmatpush1.bf16.msra.mxu1 %v2566_v63  ;;  %v2611_v28 = vld [vmem:[#allocation8 + $0x184] ss:$12 sps:$4 sm:$0xff]  }
  0xe8   :  { %2283 = vmatpush3.bf16.msra.mxu0 %v2573_v57  ;;  %1414 = vmatprep.subr.bf16.mxu1 %v2571_v1  ;;  %v2616_v57 = vld [vmem:[#allocation8 + $0x19c] ss:$12 sps:$4 sm:$0xff]  }
  0xe9   :  { %2284 = vmatprep.subr.bf16.mxu0 %v2577_v58  ;;  %v2617_v58 = vld [vmem:[#allocation8 + $0x260] ss:$12 sps:$4 sm:$0xff]  }
  0xeb   :  { %1415 = vmatpush1.bf16.msra.mxu1 %v2569_v4 }
  0xec   :  { %2285 = vmatpush3.bf16.msra.mxu0 %v2578_v61  ;;  %1416 = vmatprep.subr.bf16.mxu1 %v2576_v5  ;;  %v2614_v61 = vld [vmem:[#allocation8 + $0x198] ss:$12 sps:$4 sm:$0xff]  }
  0xed   :  { %2286 = vmatprep.subr.bf16.mxu0 %v2582_v62  ;;  %v2618_v62 = vld [vmem:[#allocation8 + $0x1a0] ss:$12 sps:$4 sm:$0xff]  }
  0xef   :  { %1417 = vmatpush1.bf16.msra.mxu1 %v2574_v8 }
  0xf0   :  { %2287 = vmatpush3.bf16.msra.mxu0 %v2583_v2  ;;  %1418 = vmatprep.subr.bf16.mxu1 %v2581_v9  ;;  %v2621_v2 = vld [vmem:[#allocation8 + $0x1b4] ss:$12 sps:$4 sm:$0xff]  }
  0xf1   :  { %2288 = vmatprep.subr.bf16.mxu0 %v2587_v3  ;;  %v2622_v3 = vld [vmem:[#allocation8 + $0x278] ss:$12 sps:$4 sm:$0xff]  }
  0xf3   :  { %1419 = vmatpush1.bf16.msra.mxu1 %v2579_v12  ;;  %v2623_v12 = vld [vmem:[#allocation8 + $0x1b8] ss:$12 sps:$4 sm:$0xff]  }
  0xf4   :  { %2289 = vmatpush3.bf16.msra.mxu0 %v2588_v6  ;;  %1420 = vmatprep.subr.bf16.mxu1 %v2586_v13 }
  0xf5   :  { %2290 = vmatprep.subr.bf16.mxu0 %v2592_v7 }
  0xf7   :  { %1421 = vmatpush1.bf16.msra.mxu1 %v2584_v15  ;;  %v2627_v15 = vld [vmem:[#allocation8 + $0x290] ss:$12 sps:$4 sm:$0xff]  }
  0xf8   :  { %2291 = vmatpush3.bf16.msra.mxu0 %v2593_v10  ;;  %1422 = vmatprep.subr.bf16.mxu1 %v2591_v16 }
  0xf9   :  { %2292 = vmatprep.subr.bf16.mxu0 %v2597_v11  ;;  %v2619_v11 = vld [vmem:[#allocation8 + $0x1b0] ss:$12 sps:$4 sm:$0xff]  }
  0xfb   :  { %1423 = vmatpush1.bf16.msra.mxu1 %v2589_v17 }
  0xfc   :  { %2293 = vmatpush3.bf16.msra.mxu0 %v2598_v14  ;;  %1424 = vmatprep.subr.bf16.mxu1 %v2596_v18  ;;  %v2626_v14 = vld [vmem:[#allocation8 + $0x1cc] ss:$12 sps:$4 sm:$0xff]  }
  0xfd   :  { %2294 = vmatprep.subr.bf16.mxu0 %v2602_v21  ;;  %v2631_v21 = vld [vmem:[#allocation8 + $0x1e4] ss:$12 sps:$4 sm:$0xff]  }
  0xff   :  { %1425 = vmatpush1.bf16.msra.mxu1 %v2594_v19  ;;  %v2624_v19 = vld [vmem:[#allocation8 + $0x1c8] ss:$12 sps:$4 sm:$0xff]  }
 0x100   :  { %1426 = vmatprep.subr.bf16.mxu1 %v2601_v20  ;;  %2295 = vmatpush3.bf16.msra.mxu0 %v2603_v23  ;;  %v2628_v20 = vld [vmem:[#allocation8 + $0x1d0] ss:$12 sps:$4 sm:$0xff]   ;;  %v2629_v23 = vld [vmem:[#allocation8 + $0x1e0] ss:$12 sps:$4 sm:$0xff]  }
 0x101   :  { %2296 = vmatprep.subr.bf16.mxu0 %v2607_v25  ;;  %v2636_v25 = vld [vmem:[#allocation8 + $0x1fc] ss:$12 sps:$4 sm:$0xff]  }
 0x103   :  { %1427 = vmatpush1.bf16.msra.mxu1 %v2599_v22  ;;  %v2632_v22 = vld [vmem:[#allocation8 + $0x2a8] ss:$12 sps:$4 sm:$0xff]  }
 0x104   :  { %1428 = vmatprep.subr.bf16.mxu1 %v2606_v24  ;;  %2297 = vmatpush3.bf16.msra.mxu0 %v2608_v27  ;;  %v2633_v24 = vld [vmem:[#allocation8 + $0x1e8] ss:$12 sps:$4 sm:$0xff]   ;;  %v218_v27 = vsub.s32 4, %v3181_v31  ;;  %v2722_v31 = vld [vmem:[#allocation11 + $0x88] sm:$0xff]  }
 0x105   :  { %2304 = vmatprep.subr.bf16.mxu0 %v2612_v29  ;;  %v2638_v29 = vld [vmem:[#allocation8 + $0x200] ss:$12 sps:$4 sm:$0xff]  }
 0x107   :  { %1429 = vmatpush1.bf16.msra.mxu1 %v2604_v26  ;;  %v2637_v26 = vld [vmem:[#allocation8 + $0x2c0] ss:$12 sps:$4 sm:$0xff]  }
 0x108   :  { %1441 = vmatprep.subr.bf16.mxu1 %v2611_v28  ;;  %v2634_v28 = vld [vmem:[#allocation8 + $0x1f8] ss:$12 sps:$4 sm:$0xff]  }
 0x19a   :  { %v473_v38 = vpop.f32.mrb[0].mxu0 }
 0x19b   :  { %v474_v39 = vadd.f32 %v473_v38, %v203_v36  ;;  %v475_v40 = vpop.f32.mrb[1].mxu0  ;;  %v2639_v38 = vld [vmem:[#allocation8 + $0x210] ss:$12 sps:$4 sm:$0xff]  }
 0x19c   :  { %v476_v41 = vadd.f32 %v475_v40, %v207_v37  ;;  %v477_v42 = vpop.f32.mrb[2].mxu0 }
 0x19d   :  { %v478_v43 = vadd.f32 %v477_v42, %v203_v36  ;;  %v479_v44 = vpop.f32.mrb[3].mxu0  ;;  %v566_v47 = vmax.f32 %v474_v39, 0.0  ;;  %v516_v60 = vpop.f32.mrb[0].mxu1  ;;  %v2642_v36 = vld [vmem:[#allocation8 + $0x2d8] ss:$12 sps:$4 sm:$0xff]  }
 0x19e   :  { %v480_v45 = vadd.f32 %v479_v44, %v207_v37  ;;  %v567_v50 = vmax.f32 %v476_v41, 0.0  ;;  %v517_v63 = vadd.f32 %v516_v60, %v211_v56  ;;  %v518_v1 = vpop.f32.mrb[1].mxu1  ;;  %v219_v37 = vrot.slane %v3184_v34, %v218_v27  ;;  %v2643_v39 = vld [vmem:[#allocation8 + $0x218] ss:$12 sps:$4 sm:$0xff]   ;;  %v2647_v42 = vld [vmem:[#allocation8 + $0x2f0] ss:$12 sps:$4 sm:$0xff]  }
 0x19f   :  { %v571_v48 = vmax.f32 %v478_v43, 0.0  ;;  %v519_v4 = vadd.f32 %v518_v1, %v215_v59  ;;  %v520_v5 = vpop.f32.mrb[2].mxu1  ;;  %v2646_v41 = vld [vmem:[#allocation8 + $0x22c] ss:$12 sps:$4 sm:$0xff]   ;;  %v2651_v34 = vld [vmem:[#allocation8 + $0x244] ss:$12 sps:$4 sm:$0xff]  }
 0x1a0   :  { %v572_v51 = vmax.f32 %v480_v45, 0.0  ;;  %v568_v6 = vmax.f32 %v517_v63, 0.0  ;;  %v521_v7 = vadd.f32 %v520_v5, %v211_v56  ;;  %v522_v8 = vpop.f32.mrb[3].mxu1  ;;  %v2655_v56 = vld [vmem:[#allocation8 + $0x25c] ss:$12 sps:$4 sm:$0xff]  }
 0x1a1   :  { %v576_v52 = vpack.c.bf16 %v571_v48, %v566_v47  ;;  %v569_v9 = vmax.f32 %v519_v4, 0.0  ;;  %v523_v10 = vadd.f32 %v522_v8, %v215_v59  ;;  %v2659_v59 = vld [vmem:[#allocation8 + $0x274] ss:$12 sps:$4 sm:$0xff]   ;;  %v2657_v60 = vld [vmem:[#allocation8 + $0x270] ss:$12 sps:$4 sm:$0xff]  }
 0x1a2   :  { %v577_v53 = vpack.c.bf16 %v572_v51, %v567_v50  ;;  %v573_v13 = vmax.f32 %v521_v7, 0.0  ;;  %v2644_v50 = vld [vmem:[#allocation8 + $0x228] ss:$12 sps:$4 sm:$0xff]   ;;  %v2648_v51 = vld [vmem:[#allocation8 + $0x230] ss:$12 sps:$4 sm:$0xff]  }
 0x1a3   :  { %v574_v16 = vmax.f32 %v523_v10, 0.0  ;;  %v2661_v63 = vld [vmem:[#allocation8 + $0x288] ss:$12 sps:$4 sm:$0xff]   ;;  %v2664_v1 = vld [vmem:[#allocation8 + $0x350] ss:$12 sps:$4 sm:$0xff]  }
 0x1a4   :  { %1430 = vmatprep.mubr.bf16.mxu1 %v577_v53  ;;  %1559 = vmatprep.mubr.bf16.mxu0 %v577_v53  ;;  %v3199_v17 = vpack.c.bf16 %v573_v13, %v568_v6  ;;  %v2668_v4 = vld [vmem:[#allocation8 + $0x368] ss:$12 sps:$4 sm:$0xff]   ;;  %v2669_v6 = vld [vmem:[#allocation8 + $0x2b8] ss:$12 sps:$4 sm:$0xff]   ;;  %v2672_v7 = vld [vmem:[#allocation8 + $0x380] ss:$12 sps:$4 sm:$0xff]  }
 0x1a5   :  { %1431 = vmatmul.mubr.bf16.vlgmr.msra.gmra.mrb[4].mxu1 %v576_v52  ;;  %1560 = vmatmul.mubr.bf16.vlgmr.msra.gmra.mrb[8].mxu0 %v576_v52  ;;  %v579_v18 = vpack.c.bf16 %v574_v16, %v569_v9  ;;  %v2671_v5 = vld [vmem:[#allocation8 + $0x2bc] ss:$12 sps:$4 sm:$0xff]   ;;  %v2675_v8 = vld [vmem:[#allocation8 + $0x2d4] ss:$12 sps:$4 sm:$0xff]   ;;  %v2676_v10 = vld [vmem:[#allocation8 + $0x398] ss:$12 sps:$4 sm:$0xff]  }
 0x1a6   :  { %1442 = vmatpush1.bf16.msra.mxu1 %v2609_v54  ;;  %2305 = vmatpush3.bf16.msra.mxu0 %v2613_v55  ;;  %v2649_v54 = vld [vmem:[#allocation8 + $0x240] ss:$12 sps:$4 sm:$0xff]   ;;  %v2652_v55 = vld [vmem:[#allocation8 + $0x308] ss:$12 sps:$4 sm:$0xff]   ;;  %v2673_v9 = vld [vmem:[#allocation8 + $0x2d0] ss:$12 sps:$4 sm:$0xff]  }
 0x1a7   :  { %1443 = vmatprep.subr.bf16.mxu1 %v2616_v57  ;;  %2306 = vmatprep.subr.bf16.mxu0 %v2617_v58  ;;  %v2653_v57 = vld [vmem:[#allocation8 + $0x258] ss:$12 sps:$4 sm:$0xff]   ;;  %v2656_v58 = vld [vmem:[#allocation8 + $0x320] ss:$12 sps:$4 sm:$0xff]   ;;  %v2680_v13 = vld [vmem:[#allocation8 + $0x3b0] ss:$12 sps:$4 sm:$0xff]  }
 0x1a8   :  { %1600 = vmatprep.mubr.bf16.mxu0 %v579_v18  ;;  %1473 = vmatprep.mubr.bf16.mxu1 %v579_v18  ;;  %v2686_v16 = vld [vmem:[#allocation8 + $0x31c] ss:$12 sps:$4 sm:$0xff]   ;;  %v2684_v18 = vld [vmem:[#allocation8 + $0x318] ss:$12 sps:$4 sm:$0xff]  }
 0x1a9   :  { %v2704_v27 = vld [vmem:[#allocation8 + $0x3ac] ss:$12 sps:$4 sm:$0xff]  }
 0x1aa   :  { %1444 = vmatpush1.bf16.msra.mxu1 %v2614_v61  ;;  %2307 = vmatpush3.bf16.msra.mxu0 %v2618_v62  ;;  %v2660_v61 = vld [vmem:[#allocation8 + $0x338] ss:$12 sps:$4 sm:$0xff]  }
 0x1ab   :  { %1445 = vmatprep.subr.bf16.mxu1 %v2621_v2  ;;  %2308 = vmatprep.subr.bf16.mxu0 %v2622_v3  ;;  %v2663_v62 = vld [vmem:[#allocation8 + $0x28c] ss:$12 sps:$4 sm:$0xff]   ;;  %v2667_v2 = vld [vmem:[#allocation8 + $0x2a4] ss:$12 sps:$4 sm:$0xff]  }
 0x1ac   :  { %v2665_v3 = vld [vmem:[#allocation8 + $0x2a0] ss:$12 sps:$4 sm:$0xff]  }
 0x1ae   :  { %1446 = vmatpush1.bf16.msra.mxu1 %v2619_v11  ;;  %2309 = vmatpush3.bf16.msra.mxu0 %v2623_v12  ;;  %v2679_v11 = vld [vmem:[#allocation8 + $0x2ec] ss:$12 sps:$4 sm:$0xff]   ;;  %v2677_v12 = vld [vmem:[#allocation8 + $0x2e8] ss:$12 sps:$4 sm:$0xff]  }
 0x1af   :  { %1447 = vmatprep.subr.bf16.mxu1 %v2626_v14  ;;  %2310 = vmatprep.subr.bf16.mxu0 %v2627_v15  ;;  %v2683_v14 = vld [vmem:[#allocation8 + $0x304] ss:$12 sps:$4 sm:$0xff]   ;;  %v2681_v15 = vld [vmem:[#allocation8 + $0x300] ss:$12 sps:$4 sm:$0xff]  }
 0x1b2   :  { %1448 = vmatpush1.bf16.msra.mxu1 %v2624_v19  ;;  %2311 = vmatpush3.bf16.msra.mxu0 %v2628_v20  ;;  %v2689_v19 = vld [vmem:[#allocation8 + $0x334] ss:$12 sps:$4 sm:$0xff]   ;;  %v2687_v20 = vld [vmem:[#allocation8 + $0x330] ss:$12 sps:$4 sm:$0xff]  }
 0x1b3   :  { %1449 = vmatprep.subr.bf16.mxu1 %v2631_v21  ;;  %2312 = vmatprep.subr.bf16.mxu0 %v2632_v22  ;;  %v2692_v21 = vld [vmem:[#allocation8 + $0x34c] ss:$12 sps:$4 sm:$0xff]   ;;  %v2690_v22 = vld [vmem:[#allocation8 + $0x348] ss:$12 sps:$4 sm:$0xff]  }
 0x1b6   :  { %1450 = vmatpush1.bf16.msra.mxu1 %v2629_v23  ;;  %2313 = vmatpush3.bf16.msra.mxu0 %v2633_v24  ;;  %v2695_v23 = vld [vmem:[#allocation8 + $0x364] ss:$12 sps:$4 sm:$0xff]   ;;  %v2693_v24 = vld [vmem:[#allocation8 + $0x360] ss:$12 sps:$4 sm:$0xff]  }
 0x1b7   :  { %1451 = vmatprep.subr.bf16.mxu1 %v2636_v25  ;;  %2314 = vmatprep.subr.bf16.mxu0 %v2637_v26  ;;  %v2696_v25 = vld [vmem:[#allocation8 + $0x378] ss:$12 sps:$4 sm:$0xff]   ;;  %v2701_v26 = vld [vmem:[#allocation8 + $0x394] ss:$12 sps:$4 sm:$0xff]  }
 0x1ba   :  { %1452 = vmatpush1.bf16.msra.mxu1 %v2634_v28  ;;  %2315 = vmatpush3.bf16.msra.mxu0 %v2638_v29  ;;  %v559_v40 = vpop.f32.mrb[4].mxu0  ;;  %v2702_v28 = vld [vmem:[#allocation8 + $0x3a8] ss:$12 sps:$4 sm:$0xff]  }
 0x1bb   :  { %1453 = vmatprep.subr.bf16.mxu1 %v2641_v30  ;;  %2316 = vmatprep.subr.bf16.mxu0 %v2642_v36  ;;  %v560_v43 = vadd.f32 %v559_v40, %v219_v37  ;;  %v2393_v44 = vpop.f32.mrb[5].mxu0  ;;  %v2705_v29 = vld [vmem:[#allocation11 + $0x40] sm:$0xff]   ;;  %v2707_v36 = vld [vmem:[#allocation11 + $0x48] sm:$0xff]   ;;  %v2711_v40 = vld [vmem:[#allocation11 + $0x58] sm:$0xff]  }
 0x1bc   :  { %v562_v45 = vpop.f32.mrb[6].mxu0  ;;  %v2706_v30 = vld [vmem:[#allocation11] sm:$0xff]   ;;  %v2715_v44 = vld [vmem:[#allocation11 + $0x68] sm:$0xff]  }
 0x1bd   :  { %v570_v47 = vmax.f32 %v560_v43, 0.0  ;;  %v563_v48 = vadd.f32 %v562_v45, %v219_v37  ;;  %v2394_v49 = vpop.f32.mrb[7].mxu0  ;;  %v2708_v37 = vld [vmem:[#allocation11 + $0x8] sm:$0xff]   ;;  %v2714_v43 = vld [vmem:[#allocation11 + $0x20] sm:$0xff]  }
 0x1be   :  { %1454 = vmatpush1.bf16.msra.mxu1 %v2639_v38  ;;  %2317 = vmatpush3.bf16.msra.mxu0 %v2643_v39  ;;  %v2709_v38 = vld [vmem:[#allocation11 + $0x50] sm:$0xff]   ;;  %v2716_v45 = vld [vmem:[#allocation11 + $0x28] sm:$0xff]   ;;  %v2719_v49 = vld [vmem:[#allocation11 + $0x78] sm:$0xff]  }
 0x1bf   :  { %1455 = vmatprep.subr.bf16.mxu1 %v2646_v41  ;;  %2318 = vmatprep.subr.bf16.mxu0 %v2647_v42  ;;  %v575_v52 = vmax.f32 %v563_v48, 0.0  ;;  %v2710_v39 = vld [vmem:[#allocation11 + $0x10] sm:$0xff]   ;;  %v2712_v41 = vld [vmem:[#allocation11 + $0x18] sm:$0xff]   ;;  %v2713_v42 = vld [vmem:[#allocation11 + $0x60] sm:$0xff]  }
 0x1c0   :  { %v2718_v48 = vld [vmem:[#allocation11 + $0x30] sm:$0xff]  }
 0x1c1   :  { %v3203_v53 = vpack.c.bf16 %v575_v52, %v570_v47  ;;  %v2717_v47 = vld [vmem:[#allocation11 + $0x70] sm:$0xff]  }
 0x1c2   :  { %1456 = vmatpush1.bf16.msra.mxu1 %v2644_v50  ;;  %2319 = vmatpush3.bf16.msra.mxu0 %v2648_v51  ;;  %v2720_v50 = vld [vmem:[#allocation11 + $0x38] sm:$0xff]  }
 0x1c3   :  { %1457 = vmatprep.subr.bf16.mxu1 %v2651_v34  ;;  %2395 = vmatprep.subr.bf16.mxu0 %v2985_v32 }
 0x1c5   :  { %1601 = vmatmul.mubr.bf16.vlgmr.msra.gmra.mrb[12].mxu0 %v3199_v17 }
 0x1c6   :  { %1458 = vmatpush1.bf16.msra.mxu1 %v2649_v54  ;;  %2396 = vmatpush3.bf16.msra.mxu0 %v2652_v55 }
 0x1c7   :  { %1459 = vmatprep.subr.bf16.mxu1 %v2655_v56  ;;  %2397 = vmatprep.subr.bf16.mxu0 %v2985_v32  ;;  %v741_v56 = vld [vmem:[#allocation10] sm:$0x7] }
 0x1c8   :  { %2411 = vmatprep.mubr.msk.bf16.mxu0 %vm2986_vm0, %v2985_v32 }
 0x1ca   :  { %1460 = vmatpush1.bf16.msra.mxu1 %v2653_v57  ;;  %2398 = vmatpush3.bf16.msra.mxu0 %v2656_v58  ;;  %v754_v57 = vrot.slane %v741_v56, %v210_v46  ;;  %v746_v46 = vrot.slane %v741_v56, %v202_v33  ;;  %v2723_v33 = vld [vmem:[#allocation11 + $0x90] sm:$0xff]  }
 0x1cb   :  { %1461 = vmatprep.subr.bf16.mxu1 %v2659_v59  ;;  %2399 = vmatprep.subr.bf16.mxu0 %v2985_v32 }
 0x1ce   :  { %1462 = vmatpush1.bf16.msra.mxu1 %v2657_v60  ;;  %2400 = vmatpush3.bf16.msra.mxu0 %v2660_v61 }
 0x1cf   :  { %1463 = vmatprep.subr.bf16.mxu1 %v2663_v62  ;;  %2401 = vmatprep.subr.bf16.mxu0 %v2985_v32 }
 0x1d2   :  { %1464 = vmatpush1.bf16.msra.mxu1 %v2661_v63  ;;  %2402 = vmatpush3.bf16.msra.mxu0 %v2664_v1 }
 0x1d3   :  { %1465 = vmatprep.subr.bf16.mxu1 %v2667_v2  ;;  %2403 = vmatprep.subr.bf16.mxu0 %v2985_v32 }
 0x1d6   :  { %1466 = vmatpush1.bf16.msra.mxu1 %v2665_v3  ;;  %2404 = vmatpush3.bf16.msra.mxu0 %v2668_v4 }
 0x1d7   :  { %1467 = vmatprep.subr.bf16.mxu1 %v2671_v5  ;;  %2405 = vmatprep.subr.bf16.mxu0 %v2985_v32 }
 0x1da   :  { %1468 = vmatpush1.bf16.msra.mxu1 %v2669_v6  ;;  %2406 = vmatpush3.bf16.msra.mxu0 %v2672_v7 }
 0x1db   :  { %1469 = vmatprep.subr.bf16.mxu1 %v2675_v8  ;;  %2407 = vmatprep.subr.bf16.mxu0 %v2985_v32 }
 0x1de   :  { %1470 = vmatpush1.bf16.msra.mxu1 %v2673_v9  ;;  %2408 = vmatpush3.bf16.msra.mxu0 %v2676_v10 }
 0x1df   :  { %1471 = vmatprep.subr.bf16.mxu1 %v2679_v11  ;;  %2409 = vmatprep.subr.bf16.mxu0 %v2985_v32 }
 0x1e2   :  { %1472 = vmatpush1.bf16.msra.mxu1 %v2677_v12  ;;  %2410 = vmatpush3.bf16.msra.mxu0 %v2680_v13 }
 0x1e3   :  { %1484 = vmatprep.subr.bf16.mxu1 %v2683_v14  ;;  %2335 = vmatprep.subr.bf16.mxu0 %v2705_v29  ;;  %v750_v14 = vrot.slane %v741_v56, %v206_v35  ;;  %v2724_v35 = vld [vmem:[#allocation11 + $0x98] sm:$0xff]   ;;  %v2725_v29 = vld [vmem:[#allocation11 + $0xa0] sm:$0xff]  }
 0x1e5   :  { %1474 = vmatmul.mubr.bf16.vlgmr.msra.gmra.mrb[4].mxu1 %v3199_v17  ;;  %2412 = vmatmul.mubr.bf16.vlgmr.msra.gmra.mrb[16].mxu0 %v3203_v53  ;;  %v2698_v17 = vld [vmem:[#allocation8 + $0x37c] ss:$12 sps:$4 sm:$0xff]  }
 0x1e6   :  { %1485 = vmatpush1.bf16.msra.mxu1 %v2681_v15  ;;  %1516 = vmatprep.mubr.bf16.mxu1 %v2984_v0  ;;  %v2699_v0 = vld [vmem:[#allocation8 + $0x390] ss:$12 sps:$4 sm:$0xff]  }
 0x1e7   :  { %1486 = vmatprep.subr.bf16.mxu1 %v2686_v16  ;;  %2336 = vmatpush3.bf16.msra.mxu0 %v2706_v30  ;;  %v2726_v30 = vld [vmem:[#allocation11 + $0xa8] sm:$0xff]  }
 0x1e8   :  { %2337 = vmatprep.subr.bf16.mxu0 %v2707_v36  ;;  %v2727_v36 = vld [vmem:[#allocation11 + $0xb0] sm:$0xff]  }
 0x1ea   :  { %1487 = vmatpush1.bf16.msra.mxu1 %v2684_v18 }
 0x1eb   :  { %1488 = vmatprep.subr.bf16.mxu1 %v2689_v19  ;;  %2338 = vmatpush3.bf16.msra.mxu0 %v2708_v37  ;;  %v2728_v37 = vld [vmem:[#allocation11 + $0xb8] sm:$0xff]  }
 0x1ec   :  { %2339 = vmatprep.subr.bf16.mxu0 %v2709_v38  ;;  %v2729_v38 = vld [vmem:[#allocation14] sm:$0xff]  }
 0x1ee   :  { %1489 = vmatpush1.bf16.msra.mxu1 %v2687_v20 }
 0x1ef   :  { %1490 = vmatprep.subr.bf16.mxu1 %v2692_v21  ;;  %2340 = vmatpush3.bf16.msra.mxu0 %v2710_v39  ;;  %v2730_v39 = vld [vmem:[#allocation14 + $0x8] sm:$0xff]  }
 0x1f0   :  { %2341 = vmatprep.subr.bf16.mxu0 %v2711_v40  ;;  %v2731_v40 = vld [vmem:[#allocation14 + $0x10] sm:$0xff]  }
 0x1f2   :  { %1491 = vmatpush1.bf16.msra.mxu1 %v2690_v22 }
 0x1f3   :  { %1492 = vmatprep.subr.bf16.mxu1 %v2695_v23  ;;  %2342 = vmatpush3.bf16.msra.mxu0 %v2712_v41  ;;  %v2732_v41 = vld [vmem:[#allocation14 + $0x18] sm:$0xff]  }
 0x1f4   :  { %2343 = vmatprep.subr.bf16.mxu0 %v2713_v42  ;;  %v2733_v42 = vld [vmem:[#allocation14 + $0x20] sm:$0xff]  }
 0x1f6   :  { %1493 = vmatpush1.bf16.msra.mxu1 %v2693_v24 }
 0x1f7   :  { %1494 = vmatprep.subr.bf16.mxu1 %v2698_v17  ;;  %2344 = vmatpush3.bf16.msra.mxu0 %v2714_v43  ;;  %v2734_v43 = vld [vmem:[#allocation14 + $0x28] sm:$0xff]  }
 0x1f8   :  { %2345 = vmatprep.subr.bf16.mxu0 %v2715_v44  ;;  %v2735_v44 = vld [vmem:[#allocation14 + $0x30] sm:$0xff]  }
 0x1fa   :  { %1495 = vmatpush1.bf16.msra.mxu1 %v2696_v25 }
 0x1fb   :  { %1496 = vmatprep.subr.bf16.mxu1 %v2701_v26  ;;  %2346 = vmatpush3.bf16.msra.mxu0 %v2716_v45  ;;  %v2736_v45 = vld [vmem:[#allocation14 + $0x38] sm:$0xff]  }
 0x1fc   :  { %2347 = vmatprep.subr.bf16.mxu0 %v2717_v47 }
 0x1fe   :  { %1497 = vmatpush1.bf16.msra.mxu1 %v2699_v0 }
 0x1ff   :  { %1498 = vmatprep.subr.bf16.mxu1 %v2704_v27  ;;  %2348 = vmatpush3.bf16.msra.mxu0 %v2718_v48 }
 0x200   :  { %2349 = vmatprep.subr.bf16.mxu0 %v2719_v49 }
 0x202   :  { %1499 = vmatpush1.bf16.msra.mxu1 %v2702_v28  ;;  %v2721_v28 = vld [vmem:[#allocation11 + $0x80] sm:$0xff]  }
 0x203   :  { %2435 = vmatprep.subr.bf16.mxu1 %v2985_v32  ;;  %2350 = vmatpush3.bf16.msra.mxu0 %v2720_v50 }
 0x204   :  { %2415 = vmatprep.subr.bf16.mxu0 %v2985_v32 }
 0x205   :  { %1517 = vmatmul.mubr.bf16.vlgmr.msra.gmra.mrb[4].mxu1 %v3203_v53 }
 0x206   :  { %2451 = vmatprep.mubr.msk.bf16.mxu1 %vm2986_vm0, %v2985_v32  ;;  %2436 = vmatpush3.bf16.msra.mxu1 %v2729_v38 }
 0x207   :  { %2437 = vmatprep.subr.bf16.mxu1 %v2985_v32 }
 0x20a   :  { %2438 = vmatpush3.bf16.msra.mxu1 %v2730_v39 }
 0x20b   :  { %2439 = vmatprep.subr.bf16.mxu1 %v2985_v32 }
 0x20e   :  { %2440 = vmatpush3.bf16.msra.mxu1 %v2731_v40 }
 0x20f   :  { %2441 = vmatprep.subr.bf16.mxu1 %v2985_v32 }
 0x212   :  { %2442 = vmatpush3.bf16.msra.mxu1 %v2732_v41 }
 0x213   :  { %2443 = vmatprep.subr.bf16.mxu1 %v2985_v32 }
 0x216   :  { %2444 = vmatpush3.bf16.msra.mxu1 %v2733_v42 }
 0x217   :  { %2445 = vmatprep.subr.bf16.mxu1 %v2985_v32 }
 0x21a   :  { %2446 = vmatpush3.bf16.msra.mxu1 %v2734_v43 }
 0x21b   :  { %2447 = vmatprep.subr.bf16.mxu1 %v2985_v32 }
 0x21e   :  { %2448 = vmatpush3.bf16.msra.mxu1 %v2735_v44 }
 0x21f   :  { %2449 = vmatprep.subr.bf16.mxu1 %v2985_v32 }
 0x222   :  { %2450 = vmatpush3.bf16.msra.mxu1 %v2736_v45 }
 0x278   :  { %v2298_v51 = vpop.f32.mrb[8].mxu0 }
 0x279   :  { %v2299_v34 = vpop.f32.mrb[9].mxu0 }
 0x27a   :  { %v2300_v52 = vadd.f32 %v2299_v34, %v2298_v51  ;;  %v2301_v53 = vpop.f32.mrb[10].mxu0 }
 0x27b   :  { %v2302_v54 = vpop.f32.mrb[11].mxu0 }
 0x27c   :  { %v2303_v55 = vadd.f32 %v2302_v54, %v2301_v53  ;;  %v1562_v60 = vadd.f32 %v2300_v52, %v754_v57  ;;  %v2239_v52 = vld [vmem:[#allocation13] ss:$0 sm:$0xff] }
 0x27e   :  { %v1565_v1 = vadd.f32 %v2303_v55, %v754_v57 }
 0x298   :  { %v2320_v58 = vpop.f32.mrb[12].mxu0 }
 0x299   :  { %v2321_v59 = vpop.f32.mrb[13].mxu0 }
 0x29a   :  { %v2322_v61 = vadd.f32 %v2321_v59, %v2320_v58  ;;  %v2323_v62 = vpop.f32.mrb[14].mxu0 }
 0x29b   :  { %v2324_v63 = vpop.f32.mrb[15].mxu0 }
 0x29c   :  { %v2325_v2 = vadd.f32 %v2324_v63, %v2323_v62  ;;  %v1603_v3 = vadd.f32 %v2322_v61, %v1562_v60  ;;  %v2264_v63 = vld [vmem:[#allocation16] ss:$0 sm:$0xff] }
 0x29e   :  { %v1606_v4 = vadd.f32 %v2325_v2, %v1565_v1 }
 0x2b8   :  { %v1643_v5 = vpop.f32.mrb[16].mxu0 }
 0x2b9   :  { %v1644_v6 = vadd.f32 %v1643_v5, %v1603_v3  ;;  %v2413_v7 = vpop.f32.mrb[17].mxu0 }
 0x2ba   :  { %v1646_v8 = vpop.f32.mrb[18].mxu0 }
 0x2bb   :  { %v1647_v9 = vadd.f32 %v1646_v8, %v1606_v4  ;;  %v2414_v10 = vpop.f32.mrb[19].mxu0  ;;  %v1652_v11 = vmax.f32 %v1644_v6, 0.0 }
 0x2bd   :  { %v1655_v12 = vmax.f32 %v1647_v9, 0.0 }
 0x2bf   :  { %v1658_v13 = vpack.c.bf16 %v1655_v12, %v1652_v11 }
 0x2d8   :  { %v1518_v15 = vpop.f32.mrb[4].mxu1 }
 0x2d9   :  { %v2455_v16 = vadd.f32 %v1518_v15, %v746_v46  ;;  %v1520_v18 = vpop.f32.mrb[5].mxu1 }
 0x2da   :  { %v2456_v19 = vadd.f32 %v1520_v18, %v750_v14  ;;  %v1522_v20 = vpop.f32.mrb[6].mxu1 }
 0x2db   :  { %v2457_v21 = vadd.f32 %v1522_v20, %v746_v46  ;;  %v1524_v22 = vpop.f32.mrb[7].mxu1  ;;  %v1650_v24 = vmax.f32 %v2455_v16, 0.0 }
 0x2dc   :  { %v2458_v23 = vadd.f32 %v1524_v22, %v750_v14  ;;  %v1651_v25 = vmax.f32 %v2456_v19, 0.0 }
 0x2dd   :  { %v1653_v17 = vmax.f32 %v2457_v21, 0.0 }
 0x2de   :  { %v1654_v26 = vmax.f32 %v2458_v23, 0.0 }
 0x2df   :  { %v1656_v0 = vpack.c.bf16 %v1653_v17, %v1650_v24 }
 0x2e0   :  { %v1657_v27 = vpack.c.bf16 %v1654_v26, %v1651_v25 }
 0x2e2   :  { %1890 = vmatprep.mubr.bf16.mxu0 %v1657_v27 }
 0x2e3   :  { %1891 = vmatmul.mubr.bf16.vlgmr.msra.gmra.mrb[20].mxu0 %v1656_v0 }
 0x2e4   :  { %2416 = vmatpush3.bf16.msra.mxu0 %v2721_v28  ;;  %2431 = vmatprep.mubr.msk.bf16.mxu0 %vm2986_vm0, %v2985_v32 }
 0x2e5   :  { %2417 = vmatprep.subr.bf16.mxu0 %v2985_v32 }
 0x2e8   :  { %2418 = vmatpush3.bf16.msra.mxu0 %v2722_v31 }
 0x2e9   :  { %2419 = vmatprep.subr.bf16.mxu0 %v2985_v32 }
 0x2ec   :  { %2420 = vmatpush3.bf16.msra.mxu0 %v2723_v33 }
 0x2ed   :  { %2421 = vmatprep.subr.bf16.mxu0 %v2985_v32 }
 0x2f0   :  { %2422 = vmatpush3.bf16.msra.mxu0 %v2724_v35 }
 0x2f1   :  { %2423 = vmatprep.subr.bf16.mxu0 %v2985_v32 }
 0x2f4   :  { %2424 = vmatpush3.bf16.msra.mxu0 %v2725_v29 }
 0x2f5   :  { %2425 = vmatprep.subr.bf16.mxu0 %v2985_v32 }
 0x2f8   :  { %2426 = vmatpush3.bf16.msra.mxu0 %v2726_v30 }
 0x2f9   :  { %2427 = vmatprep.subr.bf16.mxu0 %v2985_v32 }
 0x2fc   :  { %2428 = vmatpush3.bf16.msra.mxu0 %v2727_v36 }
 0x2fd   :  { %2429 = vmatprep.subr.bf16.mxu0 %v2985_v32 }
 0x300   :  { %2430 = vmatpush3.bf16.msra.mxu0 %v2728_v37 }
 0x303   :  { %2432 = vmatmul.mubr.bf16.vlgmr.msra.gmra.mrb[24].mxu0 %v1658_v13 }
 0x3b6   :  { %v2351_v47 = vpop.f32.mrb[20].mxu0 }
 0x3b7   :  { %v2352_v48 = vpop.f32.mrb[21].mxu0 }
 0x3b8   :  { %v2353_v49 = vadd.f32 %v2352_v48, %v2351_v47  ;;  %v2354_v50 = vpop.f32.mrb[22].mxu0 }
 0x3b9   :  { %v2355_v51 = vpop.f32.mrb[23].mxu0 }
 0x3ba   :  { %v2356_v34 = vadd.f32 %v2355_v51, %v2354_v50  ;;  %v1893_v53 = vadd.f32 %v2353_v49, %v2239_v52 }
 0x3bc   :  { %v1896_v57 = vadd.f32 %v2356_v34, %v2239_v52 }
 0x3d6   :  { %v1933_v54 = vpop.f32.mrb[24].mxu0 }
 0x3d7   :  { %v1934_v55 = vadd.f32 %v1933_v54, %v1893_v53  ;;  %v2433_v56 = vpop.f32.mrb[25].mxu0 }
 0x3d8   :  { %v1936_v58 = vpop.f32.mrb[26].mxu0 }
 0x3d9   :  { %v1937_v59 = vadd.f32 %v1936_v58, %v1896_v57  ;;  %v2434_v60 = vpop.f32.mrb[27].mxu0  ;;  %v1940_v61 = vmax.f32 %v1934_v55, 0.0 }
 0x3db   :  { %v1941_v62 = vmax.f32 %v1937_v59, 0.0 }
 0x3dd   :  { %v1942_v32 = vpack.c.bf16 %v1941_v62, %v1940_v61 }
 0x3df   :  { %2452 = vmatmul.mubr.bf16.vlgmr.msra.gmra.mrb[8].mxu1 %v1942_v32 }
 0x4b2   :  { %v2048_v1 = vpop.f32.mrb[8].mxu1 }
 0x4b3   :  { %v2049_v2 = vadd.f32 %v2264_v63, %v2048_v1  ;;  %v2453_v3 = vpop.f32.mrb[9].mxu1 }
 0x4b4   :  { %v2051_v4 = vpop.f32.mrb[10].mxu1 }
 0x4b5   :  { %2055 = vst [vmem:[#allocation17] sm:$0xff] %v2049_v2  ;;  %v2052_v5 = vadd.f32 %v2264_v63, %v2051_v4  ;;  %v2454_v6 = vpop.f32.mrb[11].mxu1 }
 0x4b7   :  { %2056 = vst [vmem:[#allocation17 + $0x8] sm:$0xff] %v2052_v5 }
 0x4b8   :  { %2946 = shalt.err (!%p2943_p6)
}
 0x4b9   :  { %s2947_s18 = scalar_lea.hbm %s3267_s9, 256 }
 0x4ba   :  { %p2948_p7 = scmp.ne.s32.totalorder %s3267_s9, %s2947_s18  ;;  %p2951_p8 = scmp.lt.u32.totalorder %s2947_s18, %s3267_s9 }
 0x4bc   :  { %p2953_p9 = pnand %p2951_p8, %p2948_p7 }
 0x4be   :  { %2956 = shalt.err (!%p2953_p9)
}
 0x4bf   :  { %s2988_s10 = smov 128   ;;  %s2989_s13 = smov 8  }
 0x4c0   :  { %2068 = dma.vmem_to_hbm [thread:$0]  %s2063_s29, 256, %s3267_s9, [#allocation4], %s2988_s10, %s2988_s10, %s2989_s13  }
 0x4c1   :  { %2967 = dma.done.wait [#allocation4], 256  }
 0x4c2   :  { %2968 = vsyncadd [#allocation4], 4294967040 }
 0x4c3   :  { %2072 = vsyncpa [#allocation3], 1 }
 0x4c4   :  { %2073 = vsyncpa [#allocation6], 1 }
 0x4c5   :  { %2074 = vsyncpa [#allocation9], 1 }
 0x4c6   :  { %2075 = vsyncpa [#allocation12], 1 }
 0x4c7   :  { %2076 = vsyncpa [#allocation15], 1 }
 0x4c8   :  { %2077 = vsyncpa [#allocation4], 1 }

</bundles_post_ra>
